<compile_context>
chip_gen: v7x
topology: tpu7x:2x2x1
jax: 0.10.0
libtpu: 0.0.40
codegen_flags: <defaults>
</compile_context>

<pallas_src>
import functools

import jax
import jax.numpy as jnp
from jax import lax
from jax.experimental import pallas as pl


def _gat_layer_body(neg_mask, h, wp, al, b, d):
    """One single-head GATConv layer on VMEM-resident values.

    neg_mask: (N, N) f32 additive mask: 0.0 on edges, -1e30 on non-edges.
    h:        (N, Fin) f32 node features.
    wp:       (Fin, D+1) f32, [W | W @ attn_r^T].
    al:       (1, D) f32 attn_l.   b: (1, D) f32 bias.
    Returns (N, D) f32, ReLU-activated.
    """
    zf = jnp.dot(h, wp, preferred_element_type=jnp.float32)       # (N, D+1)  MXU
    z = zf[:, :d]                                                 # (N, D)
    er = zf[:, d:d + 1]                                           # (N, 1) dst term (folded attn_r)

    # el[i] = <z[i], attn_l>; trans_b contraction on the feature axis yields
    # the (1, N) row orientation directly (no transpose needed for broadcast).
    dn = (((1,), (1,)), ((), ()))
    el = lax.dot_general(al, z, dn, preferred_element_type=jnp.float32)  # (1, N)

    scores = er + el                                              # e[j,i] = el[i] + er[j]
    scores = jnp.where(scores > 0, scores, 0.2 * scores)          # LeakyReLU(0.2)
    masked = scores + neg_mask                                    # non-edges -> ~-1e30
    m = jnp.max(masked, axis=-1, keepdims=True)                   # finite (self-loops)
    p = jnp.exp(masked - m)                                       # non-edges underflow to 0
    alpha = p / jnp.sum(p, axis=-1, keepdims=True)                # exact divide
    out = jnp.dot(alpha, z, preferred_element_type=jnp.float32)   # (N, D)   MXU
    return jnp.maximum(out + b, 0.0)                              # bias + F.relu


def _fused_gat3_kernel(adj_ref, x_ref, p_ref, out_ref, *, layer_meta, d):
    # Additive -inf mask built once in f32; reused across all three layers.
    adj = adj_ref[...]
    neg_mask = jnp.where(adj > 0, jnp.float32(0.0), jnp.float32(-1e30))   # (N, N)

    h = x_ref[...]                                                # (N, IN) f32
    for (row0, fin) in layer_meta:                                # static unroll, 3 layers
        wp = p_ref[row0:row0 + fin, :]                            # (fin, D+1)
        al = p_ref[row0 + fin:row0 + fin + 1, :d]                 # (1, D)
        bias = p_ref[row0 + fin + 1:row0 + fin + 2, :d]           # (1, D)
        h = _gat_layer_body(neg_mask, h, wp, al, bias, d)
    out_ref[...] = h                                              # single final store


def _pack_params(params, h_feats):
    """Fold attn_r into W and pack all layer params into one f32 slab.

    Per-layer block (start row 8-aligned):
      rows [0, Fin)  : [W | W @ attn_r^T]        (Fin, D+1)
      row  Fin       : attn_l (zero-padded to D+1)
      row  Fin + 1   : bias   (zero-padded to D+1)
    Returns (slab, meta) with meta = ((row0, Fin), ...) static Python ints.
    """
    d = h_feats
    cols = d + 1
    blocks, meta, row = [], [], 0
    for (w, al, ar, b) in params:
        fin = int(w.shape[0])
        wp = jnp.concatenate([w, w @ ar.T], axis=1)               # (fin, D+1)
        al_row = jnp.pad(al, ((0, 0), (0, cols - d)))             # (1, D+1)
        b_row = jnp.pad(b, ((0, 0), (0, cols - d)))               # (1, D+1)
        block = jnp.concatenate([wp, al_row, b_row], axis=0)      # (fin+2, D+1)
        pad_rows = (-block.shape[0]) % 8                          # keep next layer 8-aligned
        if pad_rows:
            block = jnp.pad(block, ((0, pad_rows), (0, 0)))
        meta.append((row, fin))
        row += int(block.shape[0])
        blocks.append(block)
    slab = jnp.concatenate(blocks, axis=0).astype(jnp.float32)
    return slab, tuple(meta)


def hierarchical_layers_forward(adj, x, params):
    """adj: (N, N) [dst, src] dense adjacency WITH self-loops; x: (N, in_feats) f32.

    params: list of 3 tuples (w, attn_l, attn_r, bias) for gat1/gat2/gat3."""
    n = x.shape[0]
    d = params[-1][0].shape[1]
    slab, meta = _pack_params(params, d)
    kernel = functools.partial(_fused_gat3_kernel, layer_meta=meta, d=d)
    # Single-step (grid-less) call: at this size everything fits comfortably in
    # VMEM, so default full-array VMEM blocks are used (3 input DMAs, 1 output).
    return pl.pallas_call(
        kernel,
        out_shape=jax.ShapeDtypeStruct((n, d), jnp.float32),
    )(adj, x, slab)


# ---- pure-JAX f32 reference (unfused math, exact division) for sanity check --
def _ref_layer(adj, x, w, al, ar, b):
    z = x @ w
    el = jnp.sum(z * al, axis=-1, keepdims=True)
    er = jnp.sum(z * ar, axis=-1, keepdims=True)
    s = er + el.T
    s = jnp.where(s > 0, s, 0.2 * s)
    mask = adj > 0
    masked = jnp.where(mask, s, -1e30)
    m = jnp.max(masked, axis=-1, keepdims=True)
    p = jnp.exp(masked - m) * mask
    alpha = p / jnp.sum(p, axis=-1, keepdims=True)
    return jnp.maximum(alpha @ z + b, 0.0)


def _ref_forward(adj, x, params):
    h = x
    for (w, al, ar, b) in params:
        h = _ref_layer(adj, h, w, al, ar, b)
    return h


def _init_params(key, in_feats, h_feats):
    """Deterministic synthetic parameters for gat1/gat2/gat3."""
    params = []
    dims = [(in_feats, h_feats), (h_feats, h_feats), (h_feats, h_feats)]
    for (fi, fo) in dims:
        key, kw, kl, kr, kb = jax.random.split(key, 5)
        w = 0.1 * jax.random.normal(kw, (fi, fo), jnp.float32)
        al = 0.1 * jax.random.normal(kl, (1, fo), jnp.float32)   # attn_l (heads=1)
        ar = 0.1 * jax.random.normal(kr, (1, fo), jnp.float32)   # attn_r (heads=1)
        b = 0.01 * jax.random.normal(kb, (1, fo), jnp.float32)   # bias
        params.append((w, al, ar, b))
    return params


if __name__ == "__main__":
    N = 16          # number of graph nodes
    IN_FEATS = 8
    H_FEATS = 32

    key = jax.random.PRNGKey(0)
    key, k_adj, k_x, k_p = jax.random.split(key, 4)

    # Random sparse directed graph + self-loops (dense adjacency, [dst, src]).
    adj = (jax.random.uniform(k_adj, (N, N)) < 0.3).astype(jnp.float32)
    adj = jnp.maximum(adj, jnp.eye(N, dtype=jnp.float32))

    x = jax.random.normal(k_x, (N, IN_FEATS), jnp.float32)
    params = _init_params(k_p, IN_FEATS, H_FEATS)

    out = hierarchical_layers_forward(adj, x, params)
    out = jax.block_until_ready(out)

    ref = _ref_forward(adj, x, params)
    assert out.shape == (N, H_FEATS)
    # The approx-reciprocal error source of the previous version is gone; the
    # remaining differences are matmul pass/reduction-order effects, so this
    # tolerance is conservative.
    assert jnp.allclose(out, ref, atol=1e-3, rtol=1e-3), "mismatch vs reference"

    print("KERNEL_OK")
</pallas_src>

<mosaic_0001>
module attributes {stable_mosaic.version = 11 : i64} {
  func.func @_fused_gat3_kernel(%arg0: memref<16x16xf32, #tpu.memory_space<vmem>>, %arg1: memref<16x8xf32, #tpu.memory_space<vmem>>, %arg2: memref<96x33xf32, #tpu.memory_space<vmem>>, %arg3: memref<16x32xf32, #tpu.memory_space<vmem>>) attributes {dimension_semantics = [], scalar_prefetch = 0 : i64, scratch_operands = 0 : i64, tpu.core_type = #tpu.core_type<tc>} {
    %c0 = arith.constant 0 : index
    %c0_0 = arith.constant 0 : index
    %0 = vector.load %arg0[%c0, %c0_0] : memref<16x16xf32, #tpu.memory_space<vmem>>, vector<16x16xf32>
    %cst = arith.constant 0.000000e+00 : f32
    %1 = vector.broadcast %cst : f32 to vector<16x16xf32>
    %2 = arith.cmpf ogt, %0, %1 : vector<16x16xf32>
    %cst_1 = arith.constant 0.000000e+00 : f32
    %cst_2 = arith.constant -1.000000e+30 : f32
    %3 = vector.broadcast %cst_1 : f32 to vector<16x16xf32>
    %4 = vector.broadcast %cst_2 : f32 to vector<16x16xf32>
    %5 = arith.select %2, %3, %4 : vector<16x16xi1>, vector<16x16xf32>
    %c0_3 = arith.constant 0 : index
    %c0_4 = arith.constant 0 : index
    %6 = vector.load %arg1[%c0_3, %c0_4] : memref<16x8xf32, #tpu.memory_space<vmem>>, vector<16x8xf32>
    %c0_5 = arith.constant 0 : index
    %c0_6 = arith.constant 0 : index
    %7 = vector.load %arg2[%c0_5, %c0_6] : memref<96x33xf32, #tpu.memory_space<vmem>>, vector<8x33xf32>
    %c8 = arith.constant 8 : index
    %c0_7 = arith.constant 0 : index
    %8 = vector.load %arg2[%c8, %c0_7] : memref<96x33xf32, #tpu.memory_space<vmem>>, vector<1x32xf32>
    %c9 = arith.constant 9 : index
    %c0_8 = arith.constant 0 : index
    %9 = vector.load %arg2[%c9, %c0_8] : memref<96x33xf32, #tpu.memory_space<vmem>>, vector<1x32xf32>
    %cst_9 = arith.constant dense<0.000000e+00> : vector<16x33xf32>
    %10 = tpu.matmul %6, %7, %cst_9 {dimension_numbers = #tpu.dot_dimension_numbers<[1], [0], [0], [1], [0, 0, 1, 1], [], []>} : vector<16x8xf32>, vector<8x33xf32>, vector<16x33xf32> -> vector<16x33xf32>
    %11 = vector.extract_strided_slice %10 {offsets = [0, 0], sizes = [16, 32], strides = [1, 1]} : vector<16x33xf32> to vector<16x32xf32>
    %12 = vector.extract_strided_slice %10 {offsets = [0, 32], sizes = [16, 1], strides = [1, 1]} : vector<16x33xf32> to vector<16x1xf32>
    %cst_10 = arith.constant dense<0.000000e+00> : vector<1x16xf32>
    %13 = tpu.matmul %8, %11, %cst_10 {dimension_numbers = #tpu.dot_dimension_numbers<[1], [1], [0], [0], [0, 0, 1, 0], [], []>} : vector<1x32xf32>, vector<16x32xf32>, vector<1x16xf32> -> vector<1x16xf32>
    %14 = vector.broadcast %12 : vector<16x1xf32> to vector<16x16xf32>
    %15 = vector.broadcast %13 : vector<1x16xf32> to vector<16x16xf32>
    %16 = arith.addf %14, %15 : vector<16x16xf32>
    %cst_11 = arith.constant 0.000000e+00 : f32
    %17 = vector.broadcast %cst_11 : f32 to vector<16x16xf32>
    %18 = arith.cmpf ogt, %16, %17 : vector<16x16xf32>
    %cst_12 = arith.constant 2.000000e-01 : f32
    %19 = vector.broadcast %cst_12 : f32 to vector<16x16xf32>
    %20 = arith.mulf %19, %16 : vector<16x16xf32>
    %21 = arith.select %18, %16, %20 : vector<16x16xi1>, vector<16x16xf32>
    %22 = arith.addf %21, %5 : vector<16x16xf32>
    %cst_13 = arith.constant dense<0xFF800000> : vector<16xf32>
    %23 = vector.multi_reduction <maximumf>, %22, %cst_13 [1] : vector<16x16xf32> to vector<16xf32>
    %24 = vector.shape_cast %23 : vector<16xf32> to vector<16x1xf32>
    %25 = vector.broadcast %24 : vector<16x1xf32> to vector<16x16xf32>
    %26 = arith.subf %22, %25 : vector<16x16xf32>
    %27 = math.exp %26 : vector<16x16xf32>
    %cst_14 = arith.constant dense<0.000000e+00> : vector<16xf32>
    %28 = vector.multi_reduction <add>, %27, %cst_14 [1] : vector<16x16xf32> to vector<16xf32>
    %29 = vector.shape_cast %28 : vector<16xf32> to vector<16x1xf32>
    %30 = vector.broadcast %29 : vector<16x1xf32> to vector<16x16xf32>
    %31 = arith.divf %27, %30 : vector<16x16xf32>
    %cst_15 = arith.constant dense<0.000000e+00> : vector<16x32xf32>
    %32 = tpu.matmul %31, %11, %cst_15 {dimension_numbers = #tpu.dot_dimension_numbers<[1], [0], [0], [1], [0, 0, 1, 1], [], []>} : vector<16x16xf32>, vector<16x32xf32>, vector<16x32xf32> -> vector<16x32xf32>
    %33 = vector.broadcast %9 : vector<1x32xf32> to vector<16x32xf32>
    %34 = arith.addf %32, %33 : vector<16x32xf32>
    %cst_16 = arith.constant 0.000000e+00 : f32
    %35 = vector.broadcast %cst_16 : f32 to vector<16x32xf32>
    %36 = arith.maximumf %34, %35 : vector<16x32xf32>
    %c16 = arith.constant 16 : index
    %c0_17 = arith.constant 0 : index
    %37 = vector.load %arg2[%c16, %c0_17] : memref<96x33xf32, #tpu.memory_space<vmem>>, vector<32x33xf32>
    %c48 = arith.constant 48 : index
    %c0_18 = arith.constant 0 : index
    %38 = vector.load %arg2[%c48, %c0_18] : memref<96x33xf32, #tpu.memory_space<vmem>>, vector<1x32xf32>
    %c49 = arith.constant 49 : index
    %c0_19 = arith.constant 0 : index
    %39 = vector.load %arg2[%c49, %c0_19] : memref<96x33xf32, #tpu.memory_space<vmem>>, vector<1x32xf32>
    %cst_20 = arith.constant dense<0.000000e+00> : vector<16x33xf32>
    %40 = tpu.matmul %36, %37, %cst_20 {dimension_numbers = #tpu.dot_dimension_numbers<[1], [0], [0], [1], [0, 0, 1, 1], [], []>} : vector<16x32xf32>, vector<32x33xf32>, vector<16x33xf32> -> vector<16x33xf32>
    %41 = vector.extract_strided_slice %40 {offsets = [0, 0], sizes = [16, 32], strides = [1, 1]} : vector<16x33xf32> to vector<16x32xf32>
    %42 = vector.extract_strided_slice %40 {offsets = [0, 32], sizes = [16, 1], strides = [1, 1]} : vector<16x33xf32> to vector<16x1xf32>
    %cst_21 = arith.constant dense<0.000000e+00> : vector<1x16xf32>
    %43 = tpu.matmul %38, %41, %cst_21 {dimension_numbers = #tpu.dot_dimension_numbers<[1], [1], [0], [0], [0, 0, 1, 0], [], []>} : vector<1x32xf32>, vector<16x32xf32>, vector<1x16xf32> -> vector<1x16xf32>
    %44 = vector.broadcast %42 : vector<16x1xf32> to vector<16x16xf32>
    %45 = vector.broadcast %43 : vector<1x16xf32> to vector<16x16xf32>
    %46 = arith.addf %44, %45 : vector<16x16xf32>
    %cst_22 = arith.constant 0.000000e+00 : f32
    %47 = vector.broadcast %cst_22 : f32 to vector<16x16xf32>
    %48 = arith.cmpf ogt, %46, %47 : vector<16x16xf32>
    %cst_23 = arith.constant 2.000000e-01 : f32
    %49 = vector.broadcast %cst_23 : f32 to vector<16x16xf32>
    %50 = arith.mulf %49, %46 : vector<16x16xf32>
    %51 = arith.select %48, %46, %50 : vector<16x16xi1>, vector<16x16xf32>
    %52 = arith.addf %51, %5 : vector<16x16xf32>
    %cst_24 = arith.constant dense<0xFF800000> : vector<16xf32>
    %53 = vector.multi_reduction <maximumf>, %52, %cst_24 [1] : vector<16x16xf32> to vector<16xf32>
    %54 = vector.shape_cast %53 : vector<16xf32> to vector<16x1xf32>
    %55 = vector.broadcast %54 : vector<16x1xf32> to vector<16x16xf32>
    %56 = arith.subf %52, %55 : vector<16x16xf32>
    %57 = math.exp %56 : vector<16x16xf32>
    %cst_25 = arith.constant dense<0.000000e+00> : vector<16xf32>
    %58 = vector.multi_reduction <add>, %57, %cst_25 [1] : vector<16x16xf32> to vector<16xf32>
    %59 = vector.shape_cast %58 : vector<16xf32> to vector<16x1xf32>
    %60 = vector.broadcast %59 : vector<16x1xf32> to vector<16x16xf32>
    %61 = arith.divf %57, %60 : vector<16x16xf32>
    %cst_26 = arith.constant dense<0.000000e+00> : vector<16x32xf32>
    %62 = tpu.matmul %61, %41, %cst_26 {dimension_numbers = #tpu.dot_dimension_numbers<[1], [0], [0], [1], [0, 0, 1, 1], [], []>} : vector<16x16xf32>, vector<16x32xf32>, vector<16x32xf32> -> vector<16x32xf32>
    %63 = vector.broadcast %39 : vector<1x32xf32> to vector<16x32xf32>
    %64 = arith.addf %62, %63 : vector<16x32xf32>
    %cst_27 = arith.constant 0.000000e+00 : f32
    %65 = vector.broadcast %cst_27 : f32 to vector<16x32xf32>
    %66 = arith.maximumf %64, %65 : vector<16x32xf32>
    %c56 = arith.constant 56 : index
    %c0_28 = arith.constant 0 : index
    %67 = vector.load %arg2[%c56, %c0_28] : memref<96x33xf32, #tpu.memory_space<vmem>>, vector<32x33xf32>
    %c88 = arith.constant 88 : index
    %c0_29 = arith.constant 0 : index
    %68 = vector.load %arg2[%c88, %c0_29] : memref<96x33xf32, #tpu.memory_space<vmem>>, vector<1x32xf32>
    %c89 = arith.constant 89 : index
    %c0_30 = arith.constant 0 : index
    %69 = vector.load %arg2[%c89, %c0_30] : memref<96x33xf32, #tpu.memory_space<vmem>>, vector<1x32xf32>
    %cst_31 = arith.constant dense<0.000000e+00> : vector<16x33xf32>
    %70 = tpu.matmul %66, %67, %cst_31 {dimension_numbers = #tpu.dot_dimension_numbers<[1], [0], [0], [1], [0, 0, 1, 1], [], []>} : vector<16x32xf32>, vector<32x33xf32>, vector<16x33xf32> -> vector<16x33xf32>
    %71 = vector.extract_strided_slice %70 {offsets = [0, 0], sizes = [16, 32], strides = [1, 1]} : vector<16x33xf32> to vector<16x32xf32>
    %72 = vector.extract_strided_slice %70 {offsets = [0, 32], sizes = [16, 1], strides = [1, 1]} : vector<16x33xf32> to vector<16x1xf32>
    %cst_32 = arith.constant dense<0.000000e+00> : vector<1x16xf32>
    %73 = tpu.matmul %68, %71, %cst_32 {dimension_numbers = #tpu.dot_dimension_numbers<[1], [1], [0], [0], [0, 0, 1, 0], [], []>} : vector<1x32xf32>, vector<16x32xf32>, vector<1x16xf32> -> vector<1x16xf32>
    %74 = vector.broadcast %72 : vector<16x1xf32> to vector<16x16xf32>
    %75 = vector.broadcast %73 : vector<1x16xf32> to vector<16x16xf32>
    %76 = arith.addf %74, %75 : vector<16x16xf32>
    %cst_33 = arith.constant 0.000000e+00 : f32
    %77 = vector.broadcast %cst_33 : f32 to vector<16x16xf32>
    %78 = arith.cmpf ogt, %76, %77 : vector<16x16xf32>
    %cst_34 = arith.constant 2.000000e-01 : f32
    %79 = vector.broadcast %cst_34 : f32 to vector<16x16xf32>
    %80 = arith.mulf %79, %76 : vector<16x16xf32>
    %81 = arith.select %78, %76, %80 : vector<16x16xi1>, vector<16x16xf32>
    %82 = arith.addf %81, %5 : vector<16x16xf32>
    %cst_35 = arith.constant dense<0xFF800000> : vector<16xf32>
    %83 = vector.multi_reduction <maximumf>, %82, %cst_35 [1] : vector<16x16xf32> to vector<16xf32>
    %84 = vector.shape_cast %83 : vector<16xf32> to vector<16x1xf32>
    %85 = vector.broadcast %84 : vector<16x1xf32> to vector<16x16xf32>
    %86 = arith.subf %82, %85 : vector<16x16xf32>
    %87 = math.exp %86 : vector<16x16xf32>
    %cst_36 = arith.constant dense<0.000000e+00> : vector<16xf32>
    %88 = vector.multi_reduction <add>, %87, %cst_36 [1] : vector<16x16xf32> to vector<16xf32>
    %89 = vector.shape_cast %88 : vector<16xf32> to vector<16x1xf32>
    %90 = vector.broadcast %89 : vector<16x1xf32> to vector<16x16xf32>
    %91 = arith.divf %87, %90 : vector<16x16xf32>
    %cst_37 = arith.constant dense<0.000000e+00> : vector<16x32xf32>
    %92 = tpu.matmul %91, %71, %cst_37 {dimension_numbers = #tpu.dot_dimension_numbers<[1], [0], [0], [1], [0, 0, 1, 1], [], []>} : vector<16x16xf32>, vector<16x32xf32>, vector<16x32xf32> -> vector<16x32xf32>
    %93 = vector.broadcast %69 : vector<1x32xf32> to vector<16x32xf32>
    %94 = arith.addf %92, %93 : vector<16x32xf32>
    %cst_38 = arith.constant 0.000000e+00 : f32
    %95 = vector.broadcast %cst_38 : f32 to vector<16x32xf32>
    %96 = arith.maximumf %94, %95 : vector<16x32xf32>
    %c0_39 = arith.constant 0 : index
    %c0_40 = arith.constant 0 : index
    %97 = vector.load %arg3[%c0_39, %c0_40] : memref<16x32xf32, #tpu.memory_space<vmem>>, vector<16x32xf32>
    tpu.vector_store %arg3[%c0_39, %c0_40], %96 {strides = array<i32>} : memref<16x32xf32, #tpu.memory_space<vmem>>, vector<16x32xf32>,
    return
  }
}

</mosaic_0001>

<bundles_post_ra>
// kernel: tpu_custom_call.1
= control target key start
LH: loop header
LB: loop body
LE: loop exit
PB: predicated region body
PF: predicated region fallthrough
CT: control target
= control target key end

     0   :  { %vm26_vm0 = vcmask 64512   ;;  %s1319_s0 = inlined_call_operand.vmem [shape: f32[16,16], index: 0, kind: input, shape index: {}]   ;;  %s1320_s1 = inlined_call_operand.vmem [shape: f32[16,8], index: 1, kind: input, shape index: {}]   ;;  %s1321_s2 = inlined_call_operand.vmem [shape: f32[96,33], index: 2, kind: input, shape index: {}]   ;;  %s1322_s3 = inlined_call_operand.hbm [shape: f32[16,32], index: 3, kind: output, shape index: {}]  }
   0x1   :  { %v23_v0 = vld [vmem:[%s1321_s2] sm:$0xff]  ;;  %v22_v2 = vld [vmem:[%s1320_s1 + $0x8] sm:$0xff] }
   0x2   :  { %v21_v1 = vld [vmem:[%s1320_s1] sm:$0xff]  ;;  %992 = vmatprep.subr.mxu0 %v23_v0 }
   0x3   :  { %994 = vmatprep.mubr.msk.f32.mxu0 %vm26_vm0, %v21_v1 }
   0x4   :  { %8 = vsyncpa [#allocation3], 0  ;;  %993 = vmatpush3.msra.mxu0 %v23_v0  ;;  %v1159_v3 = vmov 32   ;;  %v1160_v4 = vmov 0.0|0.0   ;;  %vm1161_vm1 = vmmov 0   ;;  %v1162_v5 = vmov 0.0  }
   0x5   :  { %995 = vmatmul.mubr.msk.f32.vlgmr.msra.gmra.mrb[0].mxu0 %vm26_vm0, %v22_v2  ;;  %1109 = vset.pattern.permute.xlu0 %v1159_v3  ;;  %vm108_vm2 = vcmask 261120   ;;  %v24_v10 = vld [vmem:[%s1321_s2 + $0x8] sm:$0x1]  ;;  %v196_v11 = vlaneseq  ;;  %v15_v15 = vld [vmem:[%s1319_s0] sm:$0xff]  ;;  %v1163_v23 = vmov -1e+30  }
   0x6   :  { %1110 = vset.pattern.permute.xlu1 %v1159_v3  ;;  %1061 = vmatprep.subr.bf16.mxu1 %v1160_v4  ;;  %vm1201_vm3 = vmpackc.low %vm108_vm2, %vm108_vm2  ;;  %vm17_vm4 = vcmp.gt.f32.partialorder %v15_v15, 0.0  ;;  %v16_v19 = vld [vmem:[%s1319_s0 + $0x8] sm:$0xff]  ;;  %vm210_vm8 = vcmask 130048   ;;  %v320_v44 = vld [vmem:[%s1321_s2 + $0x10] sm:$0xff]  ;;  %s1164_s20 = smov [#allocation2]  }
   0x7   :  { %1001 = vmatprep.mubr.msk.f32.mxu1 %vm1161_vm1, %v1162_v5  ;;  %v197_v12 = vshrl.u32 %v196_v11, 7  ;;  %v1223_v24 = vsel %vm17_vm4, 0.0, %v1163_v23  ;;  %vm18_vm5 = vcmp.gt.f32.partialorder %v16_v19, 0.0  ;;  %v321_v45 = vld [vmem:[%s1321_s2 + $0x18] sm:$0xff]  ;;  %v322_v53 = vld [vmem:[%s1321_s2 + $0x20] sm:$0xff]  ;;  %v323_v54 = vld [vmem:[%s1321_s2 + $0x28] sm:$0xff] }
   0x8   :  { %v1225_v28 = vsel %vm18_vm5, 0.0, %v1163_v23  ;;  %v1069_v46 = vpack.c.bf16 %v321_v45, %v320_v44  ;;  %v1073_v55 = vpack.c.bf16 %v323_v54, %v322_v53  ;;  %v937_v56 = vld [vmem:[%s1321_s2 + $0x9] ss:$0 sm:$0xff]  ;;  %v324_v2 = vld [vmem:[%s1321_s2 + $0x30] sm:$0x1]  ;;  %s921_s21 = sshll.u32 %s1164_s20, 4  ;;  %s922_s21 = int_to_ptr.vmem [resolvable:$true] %s921_s21 }
   0x9   :  { %v1214_v14 = vsub.s32 0, %v197_v12  ;;  %v945_v45 = vld [vmem:[%s1321_s2 + $0x31] ss:$0 sm:$0xff]  ;;  %v621_v54 = vld [vmem:[%s1321_s2 + $0x58] sm:$0x1]  ;;  %s1135_s22 = scalar_lea.vmem %s922_s21, 256  ;;  %p1140_p1 = scmp.lt.s32.totalorder %s922_s21, %s922_s21 }
   0xa   :  { %p1136_p0 = scmp.ne.s32.totalorder %s922_s21, %s1135_s22  ;;  %p1141_p2 = scmp.lt.s32.totalorder %s1135_s22, %s1135_s22 }
   0xc   :  { %p1142_p3 = por %p1141_p2, %p1140_p1 }
   0xe   :  { %p1143_p4 = pnand %p1142_p3, %p1136_p0 }
  0xd8   :  { %v996_v6 = vpop.f32.mrb[0].mxu0 }
  0xd9   :  { %v99_v7 = vpop.f32.mrb[1].mxu0 }
  0xda   :  { %v1062_v9 = vpack.c.bf16 %v996_v6, %v99_v7  ;;  %189 = vperm.xlu0 %1109, %v99_v7  }
  0xdc   :  { %1064 = vmatpush3.bf16.xpose.msk.msra.mxu1 %vm1201_vm3, %v1062_v9  ;;  %1066 = vmatprep.subr.bf16.mxu0 %v1062_v9 }
  0xdd   :  { %1068 = vmatpush3.bf16.msra.mxu0 %v1062_v9  ;;  %1077 = vmatprep.subr.bf16.mxu1 %v1160_v4 }
  0xde   :  { %193 = vperm.xlu0 %1109, %v996_v6   ;;  %1070 = vmatprep.subr.bf16.mxu0 %v1069_v46 }
  0xe3   :  { %1002 = vmatmul.mubr.msk.f32.vlgmr.msra.gmra.mrb[0].mxu1 %vm108_vm2, %v24_v10 }
  0xe4   :  { %1026 = vmatprep.mubr.msk.f32.mxu1 %vm1161_vm1, %v1162_v5 }
 0x159   :  { %v190_v13 = vpop.permute.xlu0 %189 }
 0x15d   :  { %v194_v20 = vpop.permute.xlu0 %193 }
 0x1b6   :  { %v184_v16 = vpop.f32.mrb[0].mxu1 }
 0x1b7   :  { %v199_v17 = vrot.slane %v184_v16, %v1214_v14  ;;  %v1003_v18 = vpop.f32.mrb[1].mxu1 }
 0x1b9   :  { %v200_v21 = vadd.f32 %v199_v17, %v190_v13  ;;  %v201_v22 = vadd.f32 %v199_v17, %v194_v20 }
 0x1bb   :  { %v204_v25 = vmul.f32 0.2, %v200_v21  ;;  %v205_v26 = vmul.f32 0.2, %v201_v22  ;;  %vm202_vm6 = vcmp.gt.f32.partialorder %v200_v21, 0.0  ;;  %vm203_vm7 = vcmp.gt.f32.partialorder %v201_v22, 0.0 }
 0x1bd   :  { %v206_v27 = vsel %vm202_vm6, %v200_v21, %v204_v25  ;;  %v207_v29 = vsel %vm203_vm7, %v201_v22, %v205_v26 }
 0x1be   :  { %v208_v30 = vadd.f32 %v206_v27, %v1223_v24  ;;  %v209_v32 = vadd.f32 %v207_v29, %v1225_v28 }
 0x1c0   :  { %v211_v31 = vsel %vm210_vm8, %v208_v30, -inf  ;;  %v214_v33 = vsel %vm210_vm8, %v209_v32, -inf }
 0x1c1   :  { %212 = vmax.xlane.f32.xlu1 %v211_v31 }
 0x1c5   :  { %215 = vmax.xlane.f32.xlu1 %v214_v33  ;;  %v617_v33 = vld [vmem:[%s1321_s2 + $0x38] sm:$0xff] }
 0x24e   :  { %v213_v34 = vpop.xlane.xlu1 %212 }
 0x24f   :  { %v217_v35 = vsub.f32 %v208_v30, %v213_v34  ;;  %v618_v34 = vld [vmem:[%s1321_s2 + $0x40] sm:$0xff] }
 0x251   :  { %v219_v36 = vmul.f32 1.442695, %v217_v35  ;;  %v1085_v35 = vpack.c.bf16 %v618_v34, %v617_v33 }
 0x252   :  { %v216_v37 = vpop.xlane.xlu1 %215 }
 0x253   :  { %1111 = vpow2.f32 %v219_v36  ;;  %v218_v38 = vsub.f32 %v209_v32, %v216_v37 }
 0x255   :  { %v221_v39 = vmul.f32 1.442695, %v218_v38 }
 0x257   :  { %1113 = vpow2.f32 %v221_v39 }
 0x25d   :  { %v1112_v40 = vpop.eup %1111 }
 0x25e   :  { %v223_v41 = vsel %vm210_vm8, %v1112_v40, 0.0 }
 0x25f   :  { %224 = vadd.xlane.f32.xlu0 %v223_v41 }
 0x261   :  { %v1114_v42 = vpop.eup %1113 }
 0x262   :  { %v226_v43 = vsel %vm210_vm8, %v1114_v42, 0.0 }
 0x263   :  { %227 = vadd.xlane.f32.xlu1 %v226_v43  ;;  %v620_v43 = vld [vmem:[%s1321_s2 + $0x50] sm:$0xff] }
 0x2ec   :  { %v225_v47 = vpop.xlane.xlu0 %224 }
 0x2ed   :  { %1115 = vrcp.f32 %v225_v47 }
 0x2f0   :  { %v228_v48 = vpop.xlane.xlu1 %227 }
 0x2f1   :  { %1117 = vrcp.f32 %v228_v48 }
 0x2f7   :  { %v1116_v49 = vpop.eup %1115 }
 0x2f8   :  { %v230_v50 = vmul.f32 %v1116_v49, %v1112_v40 }
 0x2fa   :  { %1008 = vmatprep.mubr.msk.f32.mxu0 %vm210_vm8, %v230_v50 }
 0x2fb   :  { %v1118_v51 = vpop.eup %1117 }
 0x2fc   :  { %v232_v52 = vmul.f32 %v1118_v51, %v1114_v42  ;;  %v619_v42 = vld [vmem:[%s1321_s2 + $0x48] sm:$0xff] }
 0x2fd   :  { %v1089_v44 = vpack.c.bf16 %v620_v43, %v619_v42 }
 0x2fe   :  { %1009 = vmatmul.mubr.msk.f32.vlgmr.msra.gmra.mrb[2].mxu0 %vm210_vm8, %v232_v52 }
 0x2ff   :  { %1072 = vmatpush3.bf16.msra.mxu0 %v1069_v46 }
 0x300   :  { %1074 = vmatprep.subr.bf16.mxu0 %v1073_v55 }
 0x303   :  { %1076 = vmatpush3.bf16.msra.mxu0 %v1073_v55 }
 0x3d1   :  { %v1010_v57 = vpop.f32.mrb[2].mxu0 }
 0x3d2   :  { %v315_v58 = vadd.f32 %v1010_v57, %v937_v56  ;;  %v309_v59 = vpop.f32.mrb[3].mxu0 }
 0x3d3   :  { %v310_v60 = vadd.f32 %v937_v56, %v309_v59 }
 0x3d4   :  { %v319_v62 = vmax.f32 %v315_v58, 0.0 }
 0x3d5   :  { %v318_v61 = vmax.f32 %v310_v60, 0.0 }
 0x3d7   :  { %1019 = vmatprep.mubr.msk.f32.mxu0 %vm108_vm2, %v318_v61 }
 0x3d8   :  { %1020 = vmatmul.mubr.msk.f32.vlgmr.msra.gmra.mrb[4].mxu0 %vm108_vm2, %v319_v62 }
 0x4ab   :  { %v1021_v63 = vpop.f32.mrb[4].mxu0 }
 0x4ac   :  { %v398_v0 = vpop.f32.mrb[5].mxu0 }
 0x4ad   :  { %v1078_v1 = vpack.c.bf16 %v1021_v63, %v398_v0  ;;  %487 = vperm.xlu1 %1110, %v398_v0  }
 0x4af   :  { %1080 = vmatpush3.bf16.xpose.msk.msra.mxu1 %vm1201_vm3, %v1078_v1  ;;  %1082 = vmatprep.subr.bf16.mxu0 %v1078_v1 }
 0x4b0   :  { %1084 = vmatpush3.bf16.msra.mxu0 %v1078_v1  ;;  %1086 = vmatprep.subr.bf16.mxu1 %v1085_v35 }
 0x4b1   :  { %491 = vperm.xlu1 %1110, %v1021_v63   ;;  %1093 = vmatprep.subr.bf16.mxu0 %v1160_v4 }
 0x4b6   :  { %1027 = vmatmul.mubr.msk.f32.vlgmr.msra.gmra.mrb[2].mxu1 %vm108_vm2, %v324_v2 }
 0x4b7   :  { %1088 = vmatpush3.bf16.msra.mxu1 %v1085_v35 }
 0x4b8   :  { %1090 = vmatprep.subr.bf16.mxu1 %v1089_v44 }
 0x4bb   :  { %1092 = vmatpush3.bf16.msra.mxu1 %v1089_v44 }
 0x52c   :  { %v488_v3 = vpop.permute.xlu1 %487 }
 0x530   :  { %v492_v10 = vpop.permute.xlu1 %491 }
 0x589   :  { %v482_v6 = vpop.f32.mrb[2].mxu1 }
 0x58a   :  { %v497_v7 = vrot.slane %v482_v6, %v1214_v14  ;;  %v1028_v9 = vpop.f32.mrb[3].mxu1 }
 0x58c   :  { %v498_v11 = vadd.f32 %v497_v7, %v488_v3  ;;  %v499_v12 = vadd.f32 %v497_v7, %v492_v10 }
 0x58e   :  { %v502_v13 = vmul.f32 0.2, %v498_v11  ;;  %v503_v15 = vmul.f32 0.2, %v499_v12  ;;  %vm501_vm9 = vcmp.gt.f32.partialorder %v499_v12, 0.0  ;;  %vm500_vm10 = vcmp.gt.f32.partialorder %v498_v11, 0.0 }
 0x590   :  { %v505_v16 = vsel %vm501_vm9, %v499_v12, %v503_v15  ;;  %v504_v4 = vsel %vm500_vm10, %v498_v11, %v502_v13 }
 0x591   :  { %v507_v17 = vadd.f32 %v505_v16, %v1225_v28  ;;  %v506_v18 = vadd.f32 %v504_v4, %v1223_v24 }
 0x593   :  { %v511_v19 = vsel %vm210_vm8, %v507_v17, -inf  ;;  %v508_v20 = vsel %vm210_vm8, %v506_v18, -inf }
 0x594   :  { %512 = vmax.xlane.f32.xlu0 %v511_v19  ;;  %509 = vmax.xlane.f32.xlu1 %v508_v20 }
 0x621   :  { %v513_v21 = vpop.xlane.xlu0 %512  ;;  %v510_v22 = vpop.xlane.xlu1 %509 }
 0x622   :  { %v515_v23 = vsub.f32 %v507_v17, %v513_v21  ;;  %v514_v25 = vsub.f32 %v506_v18, %v510_v22  ;;  %v953_v21 = vld [vmem:[%s1321_s2 + $0x59] ss:$0 sm:$0xff] }
 0x624   :  { %v516_v26 = vmul.f32 1.442695, %v514_v25  ;;  %v518_v27 = vmul.f32 1.442695, %v515_v23 }
 0x626   :  { %1119 = vpow2.f32 %v516_v26 }
 0x627   :  { %1121 = vpow2.f32 %v518_v27 }
 0x630   :  { %v1120_v29 = vpop.eup %1119 }
 0x631   :  { %v520_v30 = vsel %vm210_vm8, %v1120_v29, 0.0  ;;  %v1122_v31 = vpop.eup %1121 }
 0x632   :  { %521 = vadd.xlane.f32.xlu0 %v520_v30  ;;  %v523_v32 = vsel %vm210_vm8, %v1122_v31, 0.0 }
 0x636   :  { %524 = vadd.xlane.f32.xlu0 %v523_v32 }
 0x6bf   :  { %v522_v36 = vpop.xlane.xlu0 %521 }
 0x6c0   :  { %1123 = vrcp.f32 %v522_v36 }
 0x6c3   :  { %v525_v37 = vpop.xlane.xlu0 %524 }
 0x6c4   :  { %1125 = vrcp.f32 %v525_v37 }
 0x6ca   :  { %v1124_v38 = vpop.eup %1123 }
 0x6cb   :  { %v527_v39 = vmul.f32 %v1124_v38, %v1120_v29 }
 0x6cd   :  { %1033 = vmatprep.mubr.msk.f32.mxu0 %vm210_vm8, %v527_v39 }
 0x6ce   :  { %v1126_v40 = vpop.eup %1125 }
 0x6cf   :  { %v529_v41 = vmul.f32 %v1126_v40, %v1122_v31 }
 0x6d1   :  { %1034 = vmatmul.mubr.msk.f32.vlgmr.msra.gmra.mrb[6].mxu0 %vm210_vm8, %v529_v41 }
 0x6d2   :  { %1051 = vmatprep.mubr.msk.f32.mxu0 %vm1161_vm1, %v1162_v5 }
 0x7a4   :  { %v1035_v46 = vpop.f32.mrb[6].mxu0 }
 0x7a5   :  { %v612_v47 = vadd.f32 %v1035_v46, %v945_v45  ;;  %v606_v48 = vpop.f32.mrb[7].mxu0 }
 0x7a6   :  { %v607_v49 = vadd.f32 %v945_v45, %v606_v48 }
 0x7a7   :  { %v616_v50 = vmax.f32 %v612_v47, 0.0 }
 0x7a8   :  { %v615_v5 = vmax.f32 %v607_v49, 0.0 }
 0x7aa   :  { %1044 = vmatprep.mubr.msk.f32.mxu1 %vm108_vm2, %v615_v5 }
 0x7ab   :  { %1045 = vmatmul.mubr.msk.f32.vlgmr.msra.gmra.mrb[4].mxu1 %vm108_vm2, %v616_v50 }
 0x87e   :  { %v1046_v51 = vpop.f32.mrb[4].mxu1 }
 0x87f   :  { %788 = vperm.xlu1 %1110, %v1046_v51   ;;  %v695_v52 = vpop.f32.mrb[5].mxu1 }
 0x880   :  { %v1094_v53 = vpack.c.bf16 %v1046_v51, %v695_v52  ;;  %784 = vperm.xlu0 %1109, %v695_v52  }
 0x882   :  { %1096 = vmatpush3.bf16.xpose.msk.msra.mxu0 %vm1201_vm3, %v1094_v53  ;;  %1098 = vmatprep.subr.bf16.mxu1 %v1094_v53 }
 0x883   :  { %1100 = vmatpush3.bf16.msra.mxu1 %v1094_v53 }
 0x889   :  { %1052 = vmatmul.mubr.msk.f32.vlgmr.msra.gmra.mrb[8].mxu0 %vm108_vm2, %v621_v54 }
 0x8fe   :  { %v789_v58 = vpop.permute.xlu1 %788 }
 0x8ff   :  { %v785_v59 = vpop.permute.xlu0 %784 }
 0x95c   :  { %v779_v55 = vpop.f32.mrb[8].mxu0 }
 0x95d   :  { %v794_v56 = vrot.slane %v779_v55, %v1214_v14  ;;  %v1053_v57 = vpop.f32.mrb[9].mxu0 }
 0x95f   :  { %v795_v60 = vadd.f32 %v794_v56, %v785_v59  ;;  %v796_v61 = vadd.f32 %v794_v56, %v789_v58 }
 0x961   :  { %v799_v62 = vmul.f32 0.2, %v795_v60  ;;  %v800_v63 = vmul.f32 0.2, %v796_v61  ;;  %vm798_vm11 = vcmp.gt.f32.partialorder %v796_v61, 0.0  ;;  %vm797_vm12 = vcmp.gt.f32.partialorder %v795_v60, 0.0 }
 0x963   :  { %v802_v8 = vsel %vm798_vm11, %v796_v61, %v800_v63  ;;  %v801_v0 = vsel %vm797_vm12, %v795_v60, %v799_v62 }
 0x964   :  { %v804_v1 = vadd.f32 %v802_v8, %v1225_v28  ;;  %v803_v2 = vadd.f32 %v801_v0, %v1223_v24 }
 0x966   :  { %v808_v3 = vsel %vm210_vm8, %v804_v1, -inf  ;;  %v805_v6 = vsel %vm210_vm8, %v803_v2, -inf }
 0x967   :  { %809 = vmax.xlane.f32.xlu1 %v808_v3  ;;  %806 = vmax.xlane.f32.xlu0 %v805_v6 }
 0x9f4   :  { %v810_v14 = vpop.xlane.xlu1 %809  ;;  %v807_v7 = vpop.xlane.xlu0 %806 }
 0x9f5   :  { %v812_v9 = vsub.f32 %v804_v1, %v810_v14  ;;  %v811_v10 = vsub.f32 %v803_v2, %v807_v7 }
 0x9f7   :  { %v813_v11 = vmul.f32 1.442695, %v811_v10  ;;  %v815_v12 = vmul.f32 1.442695, %v812_v9 }
 0x9f9   :  { %1127 = vpow2.f32 %v813_v11 }
 0x9fa   :  { %1129 = vpow2.f32 %v815_v12 }
 0xa03   :  { %v1128_v13 = vpop.eup %1127 }
 0xa04   :  { %v817_v15 = vsel %vm210_vm8, %v1128_v13, 0.0  ;;  %v1130_v28 = vpop.eup %1129 }
 0xa05   :  { %818 = vadd.xlane.f32.xlu0 %v817_v15  ;;  %v820_v24 = vsel %vm210_vm8, %v1130_v28, 0.0 }
 0xa09   :  { %821 = vadd.xlane.f32.xlu0 %v820_v24 }
 0xa92   :  { %v819_v16 = vpop.xlane.xlu0 %818 }
 0xa93   :  { %1131 = vrcp.f32 %v819_v16 }
 0xa96   :  { %v822_v4 = vpop.xlane.xlu0 %821 }
 0xa97   :  { %1133 = vrcp.f32 %v822_v4 }
 0xa9d   :  { %v1132_v17 = vpop.eup %1131 }
 0xa9e   :  { %v824_v18 = vmul.f32 %v1132_v17, %v1128_v13 }
 0xaa0   :  { %1058 = vmatprep.mubr.msk.f32.mxu1 %vm210_vm8, %v824_v18 }
 0xaa1   :  { %v1134_v19 = vpop.eup %1133 }
 0xaa2   :  { %v826_v20 = vmul.f32 %v1134_v19, %v1130_v28 }
 0xaa4   :  { %1059 = vmatmul.mubr.msk.f32.vlgmr.msra.gmra.mrb[6].mxu1 %vm210_vm8, %v826_v20 }
 0xb77   :  { %v1060_v22 = vpop.f32.mrb[6].mxu1 }
 0xb78   :  { %v909_v23 = vadd.f32 %v1060_v22, %v953_v21  ;;  %v903_v25 = vpop.f32.mrb[7].mxu1 }
 0xb79   :  { %v904_v26 = vadd.f32 %v953_v21, %v903_v25 }
 0xb7a   :  { %v913_v27 = vmax.f32 %v909_v23, 0.0 }
 0xb7b   :  { %v912_v29 = vmax.f32 %v904_v26, 0.0 }
 0xb7c   :  { %915 = vst.msk [vmem:[#allocation2 + $0x8] sm:$0xff] %vm108_vm2, %v913_v27 }
 0xb7d   :  { %914 = vst.msk [vmem:[#allocation2] sm:$0xff] %vm108_vm2, %v912_v29 }
 0xb7e   :  { %1146 = shalt.err (!%p1143_p4)
}
 0xb7f   :  { %s1147_s23 = scalar_lea.hbm %s1322_s3, 256 }
 0xb80   :  { %p1148_p5 = scmp.ne.s32.totalorder %s1322_s3, %s1147_s23  ;;  %p1151_p6 = scmp.lt.u32.totalorder %s1147_s23, %s1322_s3 }
 0xb82   :  { %p1153_p7 = pnand %p1151_p6, %p1148_p5 }
 0xb84   :  { %1156 = shalt.err (!%p1153_p7)
}
 0xb85   :  { %s1165_s28 = smov 128   ;;  %s1166_s29 = smov 8  }
 0xb86   :  { %927 = dma.vmem_to_hbm [thread:$0]  %s922_s21, 256, %s1322_s3, [#allocation3], %s1165_s28, %s1165_s28, %s1166_s29  }
 0xb87   :  { %1157 = dma.done.wait [#allocation3], 256  }
 0xb88   :  { %1158 = vsyncadd [#allocation3], 4294967040 }
 0xb89   :  { %931 = vsyncpa [#allocation3], 1 }

</bundles_post_ra>
